<compile_context>
chip_gen: v6e
topology: v6e:2x2x1
jax: 0.10.0
libtpu: 0.0.40
codegen_flags: <defaults>
</compile_context>

<pallas_src>
import jax
import jax.numpy as jnp
from jax.experimental import pallas as pl
from jax.experimental.pallas import tpu as pltpu


_LANE = 128
_SUBLANE = 8
_ROW_ALIGN = 1024   # tile rows multiple of 1024 -> (tile // 128) is a multiple of 8


def _round_up(a, b):
    return (a + b - 1) // b * b


def _leaky_relu(x, slope=0.2):
    return jnp.where(x >= 0, x, slope * x)


def ae_lookup_kernel(x_ref, expand_ref, table_ref, out_ref):
    """Lane-dense lookup: out[r, c*O + o] = table[x[r, c] - 1, o].

    x_ref:      (R, 128)      int32 atom ids (1-based), lane-dense token packing
    expand_ref: (128, 128*O)  f32, expand[c, l] = 1.0 iff l // O == c  (VMEM-resident)
    table_ref:  (V, 128*O)    f32, table[v, c*O + o] = full_table[v, o] (VMEM-resident)
    out_ref:    (R, 128*O)    out[r, c*O + o] == preds[global_row*128 + c, o]
    """
    xf = x_ref[...].astype(jnp.float32)                              # (R, 128)
    # Replicate every id output_dim times along lanes with one small MXU matmul
    # (exact for small integers); keeps everything lane-dense with no relayouts.
    xe = jnp.dot(xf, expand_ref[...], preferred_element_type=jnp.float32)  # (R, 128*O)

    tab = table_ref[...]                                             # (V, 128*O)
    vocab = tab.shape[0]
    acc = jnp.zeros(xe.shape, jnp.float32)
    # TODO(synk): ids outside [1, V] produce an all-zero output row, whereas
    # torch nn.Embedding would raise an index error.
    for v in range(vocab):           # V is tiny & static -> unrolled VPU select-chain
        acc = acc + jnp.where(xe == (v + 1.0), tab[v:v + 1, :], 0.0)

    out_ref[...] = acc.astype(out_ref.dtype)


def atom_type_ae_forward(x, params, *, tile_rows=8192, out_dtype=jnp.float32):
    """x: integer atom-type ids in [1, input_dim], any leading shape.

    Returns preds with shape x.shape + (output_dim,), matching
    AtomTypeAE.forward (decode(encode(x)); no reparameterization in forward).
    out_dtype=jnp.bfloat16 halves output HBM writeback (useful on v5e) if the
    consumer tolerates it; default f32 matches the reference exactly."""
    lead_shape = x.shape
    output_dim = params["wd2"].shape[1]
    vocab = params["emb"].shape[0]

    # ---- Collapse the whole network into one [V, output_dim] table (exact:
    # the forward depends only on the discrete id). Tiny XLA chain, runs once.
    t = _leaky_relu(params["emb"])                                   # [V, E]
    t = _leaky_relu(t @ params["w1"] + params["b1"])                 # [V, H]
    t = jax.nn.sigmoid(t @ params["wf"] + params["bf"])              # [V, L]
    t = _leaky_relu(t @ params["wd1"] + params["bd1"])               # [V, H]
    full_table = t @ params["wd2"] + params["bd2"]                   # [V, O]

    lanes = _LANE * output_dim
    # Lane-tiled table: table_lanes[v, c*O + o] = full_table[v, o]
    table_lanes = jnp.tile(full_table, (1, _LANE)).astype(jnp.float32)   # [V, 128*O]
    # 0/1 expansion matrix: expand[c, l] = (l // O == c)
    col = jnp.arange(_LANE, dtype=jnp.int32)[:, None]
    lane = jnp.arange(lanes, dtype=jnp.int32)[None, :]
    expand = (lane // output_dim == col).astype(jnp.float32)             # [128, 128*O]

    n = 1
    for s in lead_shape:
        n *= s
    x_flat = x.reshape(n).astype(jnp.int32)

    # ---- Row tiling: lane-dense packing of the flat token axis. Large tiles
    # amortize the ~0.35 us per-grid-step cost, but keep >= 8 steps when there
    # is enough work so both v7x TensorCores stay busy and double-buffering
    # has something to overlap.
    n_pad = _round_up(max(n, 1), _ROW_ALIGN)
    tile = min(_round_up(tile_rows, _ROW_ALIGN), n_pad)
    cap8 = (n_pad // (8 * _ROW_ALIGN)) * _ROW_ALIGN
    if cap8 >= _ROW_ALIGN:
        tile = min(tile, cap8)
    n_pad = _round_up(n_pad, tile)

    if n_pad != n:
        # Pad with a valid atom id; padded rows are sliced off below.
        x_flat = jnp.pad(x_flat, (0, n_pad - n), constant_values=1)
    x2d = x_flat.reshape(n_pad // _LANE, _LANE)                      # lane-dense ids

    rows_per_tile = tile // _LANE                                    # multiple of 8
    grid = (n_pad // tile,)

    # ---- VMEM budget: double-buffered lane-dense id/output tiles + the two
    # small resident tables + intermediates; cap well below physical VMEM
    # (chip-aware: v7x has only 64 MiB).
    out_item = jnp.dtype(out_dtype).itemsize

    def _pad_bytes(r, c, item=4):
        return _round_up(max(r, 1), _SUBLANE) * _round_up(max(c, 1), _LANE) * item

    x_tile_b = _pad_bytes(rows_per_tile, _LANE)
    out_tile_b = _pad_bytes(rows_per_tile, lanes, out_item)
    resident_b = _pad_bytes(_LANE, lanes) + _pad_bytes(vocab, lanes)
    interm_b = 3 * _pad_bytes(rows_per_tile, lanes)                  # xe / mask / acc
    need = 2 * (x_tile_b + out_tile_b) + resident_b + interm_b + (2 << 20)

    try:
        vmem_phys = int(pltpu.get_tpu_info().vmem_capacity_bytes)
    except Exception:
        vmem_phys = 64 << 20                                         # v7x-conservative fallback
    vmem_cap = (vmem_phys * 3) // 8       # 48 MiB on 128 MiB parts, 24 MiB on v7x
    vmem_limit = int(min(max(need, 4 << 20), vmem_cap))

    cost = pl.CostEstimate(
        flops=int(n_pad * (2 * _LANE * output_dim + 3 * vocab * output_dim)),
        transcendentals=0,
        bytes_accessed=int(n_pad * 4 + n_pad * output_dim * out_item
                           + expand.size * 4 + table_lanes.size * 4),
    )

    out2d = pl.pallas_call(
        ae_lookup_kernel,
        out_shape=jax.ShapeDtypeStruct((n_pad // _LANE, lanes), out_dtype),
        grid=grid,
        in_specs=[
            pl.BlockSpec((rows_per_tile, _LANE), lambda i: (i, 0)),   # streamed ids
            pl.BlockSpec(expand.shape, lambda i: (0, 0)),             # VMEM-resident
            pl.BlockSpec(table_lanes.shape, lambda i: (0, 0)),        # VMEM-resident
        ],
        out_specs=pl.BlockSpec((rows_per_tile, lanes), lambda i: (i, 0)),
        compiler_params=pltpu.CompilerParams(
            dimension_semantics=("parallel",),    # megacore split on v7x
            vmem_limit_bytes=vmem_limit,
        ),
        cost_estimate=cost,
    )(x2d, expand, table_lanes)

    # (n_pad//128, 128*O) -> (n_pad, O) is a pure row-major reshape: free.
    preds = out2d.reshape(n_pad, output_dim)[:n]
    return preds.reshape(lead_shape + (output_dim,))


def init_params(key, input_dim, latent_dim, embedding_dim, hidden_dim, output_dim):
    """Deterministic synthetic parameters (weights stored as [in, out])."""
    ks = jax.random.split(key, 5)
    scale = 0.1

    def dense(k, fan_in, fan_out):
        kw, kb = jax.random.split(k)
        w = scale * jax.random.normal(kw, (fan_in, fan_out), jnp.float32)
        b = scale * jax.random.normal(kb, (1, fan_out), jnp.float32)
        return w, b

    emb = scale * jax.random.normal(ks[0], (input_dim, embedding_dim), jnp.float32)
    w1, b1 = dense(ks[1], embedding_dim, hidden_dim)   # e_fc1
    wf, bf = dense(ks[2], hidden_dim, latent_dim)      # final
    wd1, bd1 = dense(ks[3], latent_dim, hidden_dim)    # d_fc1
    wd2, bd2 = dense(ks[4], hidden_dim, output_dim)    # d_fc2
    return {"emb": emb, "w1": w1, "b1": b1, "wf": wf, "bf": bf,
            "wd1": wd1, "bd1": bd1, "wd2": wd2, "bd2": bd2}


def _reference_forward(x, params):
    # Pure-JAX reference mirroring AtomTypeAE.forward.
    emb = params["emb"][x - 1]
    h = _leaky_relu(emb)
    h = _leaky_relu(h @ params["w1"] + params["b1"][0])
    z = jax.nn.sigmoid(h @ params["wf"] + params["bf"][0])
    hd = _leaky_relu(z @ params["wd1"] + params["bd1"][0])
    return hd @ params["wd2"] + params["bd2"][0]


if __name__ == "__main__":
    # Sizes consistent with the module: ids in [1, input_dim].
    input_dim = 8
    embedding_dim = 32
    hidden_dim = 32
    latent_dim = 16
    output_dim = 8
    batch, seq = 2, 8

    key = jax.random.PRNGKey(0)
    k_param, k_x, k_x2, k_x3 = jax.random.split(key, 4)

    params = init_params(k_param, input_dim, latent_dim,
                         embedding_dim, hidden_dim, output_dim)

    # --- small case (single tile, single grid step) ---
    x = jax.random.randint(k_x, (batch, seq), 1, input_dim + 1, dtype=jnp.int32)
    preds = atom_type_ae_forward(x, params)
    jax.block_until_ready(preds)
    p_ref = _reference_forward(x, params)
    assert preds.shape == (batch, seq, output_dim)
    assert jnp.allclose(preds, p_ref, atol=1e-5, rtol=1e-5)

    # --- medium case exercising tail padding ---
    x_mid = jax.random.randint(k_x2, (3, 700), 1, input_dim + 1, dtype=jnp.int32)
    preds_mid = atom_type_ae_forward(x_mid, params)
    jax.block_until_ready(preds_mid)
    p_mid_ref = _reference_forward(x_mid, params)
    assert preds_mid.shape == (3, 700, output_dim)
    assert jnp.allclose(preds_mid, p_mid_ref, atol=1e-5, rtol=1e-5)

    # --- larger case exercising a multi-step grid, resident tables, megacore ---
    x_big = jax.random.randint(k_x3, (16, 1024), 1, input_dim + 1, dtype=jnp.int32)
    preds_big = atom_type_ae_forward(x_big, params)
    jax.block_until_ready(preds_big)
    p_big_ref = _reference_forward(x_big, params)
    assert preds_big.shape == (16, 1024, output_dim)
    assert jnp.allclose(preds_big, p_big_ref, atol=1e-5, rtol=1e-5)

    print("KERNEL_OK")
</pallas_src>

<mosaic_0001>
module attributes {stable_mosaic.version = 11 : i64} {
  func.func @ae_lookup_kernel(%arg0: i32, %arg1: memref<8x128xi32, #tpu.memory_space<vmem>>, %arg2: memref<128x1024xf32, #tpu.memory_space<vmem>>, %arg3: memref<8x1024xf32, #tpu.memory_space<vmem>>, %arg4: memref<8x1024xf32, #tpu.memory_space<vmem>>) attributes {dimension_semantics = [#tpu.dimension_semantics<parallel>], iteration_bounds = array<i64: 1>, scalar_prefetch = 0 : i64, scratch_operands = 0 : i64, tpu.core_type = #tpu.core_type<tc>, window_params = [{transform_indices = @transform_0, window_bounds = array<i64: 8, 128>}, {pipeline_mode = #tpu.pipeline_mode<synchronous>, transform_indices = @transform_1, window_bounds = array<i64: 128, 1024>}, {pipeline_mode = #tpu.pipeline_mode<synchronous>, transform_indices = @transform_2, window_bounds = array<i64: 8, 1024>}, {transform_indices = @transform_3, window_bounds = array<i64: 8, 1024>}]} {
    %c0 = arith.constant 0 : index
    %c0_0 = arith.constant 0 : index
    %0 = vector.load %arg1[%c0, %c0_0] : memref<8x128xi32, #tpu.memory_space<vmem>>, vector<8x128xi32>
    %1 = arith.sitofp %0 : vector<8x128xi32> to vector<8x128xf32>
    %c0_1 = arith.constant 0 : index
    %c0_2 = arith.constant 0 : index
    %2 = vector.load %arg2[%c0_1, %c0_2] : memref<128x1024xf32, #tpu.memory_space<vmem>>, vector<128x1024xf32>
    %cst = arith.constant dense<0.000000e+00> : vector<8x1024xf32>
    %3 = tpu.matmul %1, %2, %cst {dimension_numbers = #tpu.dot_dimension_numbers<[1], [0], [0], [1], [0, 0, 1, 1], [], []>} : vector<8x128xf32>, vector<128x1024xf32>, vector<8x1024xf32> -> vector<8x1024xf32>
    %c0_3 = arith.constant 0 : index
    %c0_4 = arith.constant 0 : index
    %4 = vector.load %arg3[%c0_3, %c0_4] : memref<8x1024xf32, #tpu.memory_space<vmem>>, vector<8x1024xf32>
    %cst_5 = arith.constant 0.000000e+00 : f32
    %5 = vector.broadcast %cst_5 : f32 to vector<8x1024xf32>
    %cst_6 = arith.constant 1.000000e+00 : f32
    %6 = vector.broadcast %cst_6 : f32 to vector<8x1024xf32>
    %7 = arith.cmpf oeq, %3, %6 : vector<8x1024xf32>
    %8 = vector.extract_strided_slice %4 {offsets = [0, 0], sizes = [1, 1024], strides = [1, 1]} : vector<8x1024xf32> to vector<1x1024xf32>
    %cst_7 = arith.constant 0.000000e+00 : f32
    %9 = vector.shape_cast %8 : vector<1x1024xf32> to vector<1x1024xf32>
    %10 = vector.broadcast %9 : vector<1x1024xf32> to vector<8x1024xf32>
    %11 = vector.broadcast %cst_7 : f32 to vector<8x1024xf32>
    %12 = arith.select %7, %10, %11 : vector<8x1024xi1>, vector<8x1024xf32>
    %13 = arith.addf %5, %12 : vector<8x1024xf32>
    %cst_8 = arith.constant 2.000000e+00 : f32
    %14 = vector.broadcast %cst_8 : f32 to vector<8x1024xf32>
    %15 = arith.cmpf oeq, %3, %14 : vector<8x1024xf32>
    %16 = vector.extract_strided_slice %4 {offsets = [1, 0], sizes = [1, 1024], strides = [1, 1]} : vector<8x1024xf32> to vector<1x1024xf32>
    %cst_9 = arith.constant 0.000000e+00 : f32
    %17 = vector.shape_cast %16 : vector<1x1024xf32> to vector<1x1024xf32>
    %18 = vector.broadcast %17 : vector<1x1024xf32> to vector<8x1024xf32>
    %19 = vector.broadcast %cst_9 : f32 to vector<8x1024xf32>
    %20 = arith.select %15, %18, %19 : vector<8x1024xi1>, vector<8x1024xf32>
    %21 = arith.addf %13, %20 : vector<8x1024xf32>
    %cst_10 = arith.constant 3.000000e+00 : f32
    %22 = vector.broadcast %cst_10 : f32 to vector<8x1024xf32>
    %23 = arith.cmpf oeq, %3, %22 : vector<8x1024xf32>
    %24 = vector.extract_strided_slice %4 {offsets = [2, 0], sizes = [1, 1024], strides = [1, 1]} : vector<8x1024xf32> to vector<1x1024xf32>
    %cst_11 = arith.constant 0.000000e+00 : f32
    %25 = vector.shape_cast %24 : vector<1x1024xf32> to vector<1x1024xf32>
    %26 = vector.broadcast %25 : vector<1x1024xf32> to vector<8x1024xf32>
    %27 = vector.broadcast %cst_11 : f32 to vector<8x1024xf32>
    %28 = arith.select %23, %26, %27 : vector<8x1024xi1>, vector<8x1024xf32>
    %29 = arith.addf %21, %28 : vector<8x1024xf32>
    %cst_12 = arith.constant 4.000000e+00 : f32
    %30 = vector.broadcast %cst_12 : f32 to vector<8x1024xf32>
    %31 = arith.cmpf oeq, %3, %30 : vector<8x1024xf32>
    %32 = vector.extract_strided_slice %4 {offsets = [3, 0], sizes = [1, 1024], strides = [1, 1]} : vector<8x1024xf32> to vector<1x1024xf32>
    %cst_13 = arith.constant 0.000000e+00 : f32
    %33 = vector.shape_cast %32 : vector<1x1024xf32> to vector<1x1024xf32>
    %34 = vector.broadcast %33 : vector<1x1024xf32> to vector<8x1024xf32>
    %35 = vector.broadcast %cst_13 : f32 to vector<8x1024xf32>
    %36 = arith.select %31, %34, %35 : vector<8x1024xi1>, vector<8x1024xf32>
    %37 = arith.addf %29, %36 : vector<8x1024xf32>
    %cst_14 = arith.constant 5.000000e+00 : f32
    %38 = vector.broadcast %cst_14 : f32 to vector<8x1024xf32>
    %39 = arith.cmpf oeq, %3, %38 : vector<8x1024xf32>
    %40 = vector.extract_strided_slice %4 {offsets = [4, 0], sizes = [1, 1024], strides = [1, 1]} : vector<8x1024xf32> to vector<1x1024xf32>
    %cst_15 = arith.constant 0.000000e+00 : f32
    %41 = vector.shape_cast %40 : vector<1x1024xf32> to vector<1x1024xf32>
    %42 = vector.broadcast %41 : vector<1x1024xf32> to vector<8x1024xf32>
    %43 = vector.broadcast %cst_15 : f32 to vector<8x1024xf32>
    %44 = arith.select %39, %42, %43 : vector<8x1024xi1>, vector<8x1024xf32>
    %45 = arith.addf %37, %44 : vector<8x1024xf32>
    %cst_16 = arith.constant 6.000000e+00 : f32
    %46 = vector.broadcast %cst_16 : f32 to vector<8x1024xf32>
    %47 = arith.cmpf oeq, %3, %46 : vector<8x1024xf32>
    %48 = vector.extract_strided_slice %4 {offsets = [5, 0], sizes = [1, 1024], strides = [1, 1]} : vector<8x1024xf32> to vector<1x1024xf32>
    %cst_17 = arith.constant 0.000000e+00 : f32
    %49 = vector.shape_cast %48 : vector<1x1024xf32> to vector<1x1024xf32>
    %50 = vector.broadcast %49 : vector<1x1024xf32> to vector<8x1024xf32>
    %51 = vector.broadcast %cst_17 : f32 to vector<8x1024xf32>
    %52 = arith.select %47, %50, %51 : vector<8x1024xi1>, vector<8x1024xf32>
    %53 = arith.addf %45, %52 : vector<8x1024xf32>
    %cst_18 = arith.constant 7.000000e+00 : f32
    %54 = vector.broadcast %cst_18 : f32 to vector<8x1024xf32>
    %55 = arith.cmpf oeq, %3, %54 : vector<8x1024xf32>
    %56 = vector.extract_strided_slice %4 {offsets = [6, 0], sizes = [1, 1024], strides = [1, 1]} : vector<8x1024xf32> to vector<1x1024xf32>
    %cst_19 = arith.constant 0.000000e+00 : f32
    %57 = vector.shape_cast %56 : vector<1x1024xf32> to vector<1x1024xf32>
    %58 = vector.broadcast %57 : vector<1x1024xf32> to vector<8x1024xf32>
    %59 = vector.broadcast %cst_19 : f32 to vector<8x1024xf32>
    %60 = arith.select %55, %58, %59 : vector<8x1024xi1>, vector<8x1024xf32>
    %61 = arith.addf %53, %60 : vector<8x1024xf32>
    %cst_20 = arith.constant 8.000000e+00 : f32
    %62 = vector.broadcast %cst_20 : f32 to vector<8x1024xf32>
    %63 = arith.cmpf oeq, %3, %62 : vector<8x1024xf32>
    %64 = vector.extract_strided_slice %4 {offsets = [7, 0], sizes = [1, 1024], strides = [1, 1]} : vector<8x1024xf32> to vector<1x1024xf32>
    %cst_21 = arith.constant 0.000000e+00 : f32
    %65 = vector.shape_cast %64 : vector<1x1024xf32> to vector<1x1024xf32>
    %66 = vector.broadcast %65 : vector<1x1024xf32> to vector<8x1024xf32>
    %67 = vector.broadcast %cst_21 : f32 to vector<8x1024xf32>
    %68 = arith.select %63, %66, %67 : vector<8x1024xi1>, vector<8x1024xf32>
    %69 = arith.addf %61, %68 : vector<8x1024xf32>
    %c0_22 = arith.constant 0 : index
    %c0_23 = arith.constant 0 : index
    %70 = vector.load %arg4[%c0_22, %c0_23] : memref<8x1024xf32, #tpu.memory_space<vmem>>, vector<8x1024xf32>
    tpu.vector_store %arg4[%c0_22, %c0_23], %69 {strides = array<i32>} : memref<8x1024xf32, #tpu.memory_space<vmem>>, vector<8x1024xf32>,
    return
  }
  func.func @transform_0(%arg0: i32) -> (i32, i32) {
    %c0_i32 = arith.constant 0 : i32
    %c0_i32_0 = arith.constant 0 : i32
    return %arg0, %c0_i32 : i32, i32
  }
  func.func @transform_1(%arg0: i32) -> (i32, i32) {
    %c0_i32 = arith.constant 0 : i32
    %c0_i32_0 = arith.constant 0 : i32
    %c0_i32_1 = arith.constant 0 : i32
    return %c0_i32, %c0_i32_0 : i32, i32
  }
  func.func @transform_2(%arg0: i32) -> (i32, i32) {
    %c0_i32 = arith.constant 0 : i32
    %c0_i32_0 = arith.constant 0 : i32
    %c0_i32_1 = arith.constant 0 : i32
    return %c0_i32, %c0_i32_0 : i32, i32
  }
  func.func @transform_3(%arg0: i32) -> (i32, i32) {
    %c0_i32 = arith.constant 0 : i32
    %c0_i32_0 = arith.constant 0 : i32
    return %arg0, %c0_i32 : i32, i32
  }
}

</mosaic_0001>

<bundles_post_ra>
// kernel: tpu_custom_call.1
= control target key start
LH: loop header
LB: loop body
LE: loop exit
PB: predicated region body
PF: predicated region fallthrough
CT: control target
= control target key end

     0   :  { %8 = vsyncpa [#allocation3], 0  ;;  %s1352_s0 = inlined_call_operand.hbm [shape: s32[8,128], index: 0, kind: input, shape index: {}]   ;;  %s1353_s1 = inlined_call_operand.hbm [shape: f32[128,1024], index: 1, kind: input, shape index: {}]   ;;  %s1354_s2 = inlined_call_operand.hbm [shape: f32[8,1024], index: 2, kind: input, shape index: {}]   ;;  %s1355_s3 = inlined_call_operand.hbm [shape: f32[8,1024], index: 3, kind: output, shape index: {}]  }
   0x1   :  { %9 = vsyncpa [#allocation6], 0 }
   0x2   :  { %10 = vsyncpa [#allocation4], 0  ;;  %s1039_s12 = smov [#allocation5]  }
   0x3   :  { %s26_s13 = sshll.u32 %s1039_s12, 4  ;;  %s27_s13 = int_to_ptr.vmem [resolvable:$true] %s26_s13 }
   0x4   :  { %s961_s14 = scalar_lea.vmem %s27_s13, 16384  ;;  %p966_p1 = scmp.lt.s32.totalorder %s27_s13, %s27_s13 }
   0x5   :  { %p962_p0 = scmp.ne.s32.totalorder %s27_s13, %s961_s14  ;;  %p967_p2 = scmp.lt.s32.totalorder %s961_s14, %s961_s14 }
   0x7   :  { %p968_p3 = por %p967_p2, %p966_p1 }
   0x9   :  { %p969_p4 = pnand %p968_p3, %p962_p0 }
   0xb   :  { %972 = shalt.err (!%p969_p4)
}
   0xc   :  { %s1040_s15 = smov 1024   ;;  %s1041_s16 = smov 64  }
   0xd   :  { %32 = dma.hbm_to_vmem [thread:$0]  %s1353_s1, 16384, %s27_s13, [#allocation6], %s1040_s15, %s1040_s15, %s1041_s16  }
   0xe   :  { %s1042_s19 = smov [#allocation2]   ;;  %s1043_s21 = smov [#allocation7]  }
   0xf   :  { %s17_s20 = sshll.u32 %s1042_s19, 4  ;;  %s39_s22 = sshll.u32 %s1043_s21, 4  ;;  %s18_s20 = int_to_ptr.vmem [resolvable:$true] %s17_s20  ;;  %s40_s22 = int_to_ptr.vmem [resolvable:$true] %s39_s22 }
  0x10   :  { %s981_s23 = scalar_lea.vmem %s18_s20, 128  ;;  %p986_p6 = scmp.lt.s32.totalorder %s18_s20, %s18_s20 }
  0x11   :  { %p982_p5 = scmp.ne.s32.totalorder %s18_s20, %s981_s23  ;;  %p987_p7 = scmp.lt.s32.totalorder %s981_s23, %s981_s23 }
  0x13   :  { %p988_p8 = por %p987_p7, %p986_p6 }
  0x15   :  { %p989_p9 = pnand %p988_p8, %p982_p5 }
  0x17   :  { %992 = shalt.err (!%p989_p9)
}
  0x18   :  { %20 = dma.hbm_to_vmem [thread:$0]  %s1352_s0, 128, %s18_s20, [#allocation3]  }
  0x19   :  { %s1001_s26 = scalar_lea.vmem %s40_s22, 1024  ;;  %p1006_p11 = scmp.lt.s32.totalorder %s40_s22, %s40_s22 }
  0x1a   :  { %p1002_p10 = scmp.ne.s32.totalorder %s40_s22, %s1001_s26  ;;  %p1007_p12 = scmp.lt.s32.totalorder %s1001_s26, %s1001_s26 }
  0x1c   :  { %p1008_p13 = por %p1007_p12, %p1006_p11 }
  0x1e   :  { %p1009_p0 = pnand %p1008_p13, %p1002_p10 }
  0x20   :  { %1012 = shalt.err (!%p1009_p0)
}
  0x21   :  { %42 = dma.hbm_to_vmem [thread:$0]  %s1354_s2, 1024, %s40_s22, [#allocation6]  }
  0x22   :  { %1033 = dma.done.wait [#allocation3], 128  }
  0x23   :  { %1034 = vsyncadd [#allocation3], 4294967168 }
  0x24   :  { %1035 = dma.done.wait [#allocation6], 17408  }
  0x25   :  { %1036 = vsyncadd [#allocation6], 4294949888  ;;  %v1044_v0 = vmov 0.0   ;;  %v175_v1 = vld [vmem:[#allocation5 + $0x3c8] sm:$0xff]  ;;  %v177_v2 = vld [vmem:[#allocation5 + $0x3d8] sm:$0xff]  ;;  %s1045_s0 = smov [#allocation8]  }
  0x26   :  { %246 = vmatprep.mubr.f32.mxu0 %v1044_v0  ;;  %317 = vmatprep.mubr.f32.mxu1 %v1044_v0  ;;  %v174_v3 = vld [vmem:[#allocation5 + $0x3c0] sm:$0xff]  ;;  %v176_v4 = vld [vmem:[#allocation5 + $0x3d0] sm:$0xff]  ;;  %v167_v5 = vld [vmem:[#allocation5 + $0x388] sm:$0xff]  ;;  %s936_s2 = sshll.u32 %s1045_s0, 4  ;;  %s937_s2 = int_to_ptr.vmem [resolvable:$true] %s936_s2 }
  0x27   :  { %182 = vmatprep.subr.mxu0 %v175_v1  ;;  %253 = vmatprep.subr.mxu1 %v177_v2  ;;  %v169_v6 = vld [vmem:[#allocation5 + $0x398] sm:$0xff]  ;;  %v166_v7 = vld [vmem:[#allocation5 + $0x380] sm:$0xff]  ;;  %v168_v8 = vld [vmem:[#allocation5 + $0x390] sm:$0xff]  ;;  %s1013_s28 = scalar_lea.vmem %s937_s2, 1024  ;;  %p1018_p2 = scmp.lt.s32.totalorder %s937_s2, %s937_s2 }
  0x28   :  { %183 = vmatpush1.msra.mxu0 %v174_v3  ;;  %254 = vmatpush1.msra.mxu1 %v176_v4  ;;  %v159_v9 = vld [vmem:[#allocation5 + $0x348] sm:$0xff]  ;;  %v161_v10 = vld [vmem:[#allocation5 + $0x358] sm:$0xff]  ;;  %v158_v11 = vld [vmem:[#allocation5 + $0x340] sm:$0xff]  ;;  %p1014_p1 = scmp.ne.s32.totalorder %s937_s2, %s1013_s28  ;;  %p1019_p3 = scmp.lt.s32.totalorder %s1013_s28, %s1013_s28 }
  0x29   :  { %184 = vmatprep.subr.mxu0 %v167_v5  ;;  %255 = vmatprep.subr.mxu1 %v169_v6  ;;  %v160_v12 = vld [vmem:[#allocation5 + $0x350] sm:$0xff]  ;;  %v151_v13 = vld [vmem:[#allocation5 + $0x308] sm:$0xff]  ;;  %v153_v14 = vld [vmem:[#allocation5 + $0x318] sm:$0xff] }
  0x2a   :  { %185 = vmatpush1.msra.mxu0 %v166_v7  ;;  %256 = vmatpush1.msra.mxu1 %v168_v8  ;;  %v150_v15 = vld [vmem:[#allocation5 + $0x300] sm:$0xff]  ;;  %v152_v16 = vld [vmem:[#allocation5 + $0x310] sm:$0xff]  ;;  %v143_v17 = vld [vmem:[#allocation5 + $0x2c8] sm:$0xff]  ;;  %p1020_p4 = por %p1019_p3, %p1018_p2 }
  0x2b   :  { %186 = vmatprep.subr.mxu0 %v159_v9  ;;  %257 = vmatprep.subr.mxu1 %v161_v10  ;;  %v145_v18 = vld [vmem:[#allocation5 + $0x2d8] sm:$0xff]  ;;  %v142_v19 = vld [vmem:[#allocation5 + $0x2c0] sm:$0xff]  ;;  %v144_v20 = vld [vmem:[#allocation5 + $0x2d0] sm:$0xff] }
  0x2c   :  { %187 = vmatpush1.msra.mxu0 %v158_v11  ;;  %258 = vmatpush1.msra.mxu1 %v160_v12  ;;  %v135_v21 = vld [vmem:[#allocation5 + $0x288] sm:$0xff]  ;;  %v137_v22 = vld [vmem:[#allocation5 + $0x298] sm:$0xff]  ;;  %v134_v23 = vld [vmem:[#allocation5 + $0x280] sm:$0xff]  ;;  %p1021_p5 = pnand %p1020_p4, %p1014_p1 }
  0x2d   :  { %188 = vmatprep.subr.mxu0 %v151_v13  ;;  %259 = vmatprep.subr.mxu1 %v153_v14  ;;  %v136_v24 = vld [vmem:[#allocation5 + $0x290] sm:$0xff]  ;;  %v127_v25 = vld [vmem:[#allocation5 + $0x248] sm:$0xff]  ;;  %v129_v26 = vld [vmem:[#allocation5 + $0x258] sm:$0xff] }
  0x2e   :  { %189 = vmatpush1.msra.mxu0 %v150_v15  ;;  %260 = vmatpush1.msra.mxu1 %v152_v16  ;;  %v126_v27 = vld [vmem:[#allocation5 + $0x240] sm:$0xff]  ;;  %v128_v28 = vld [vmem:[#allocation5 + $0x250] sm:$0xff]  ;;  %v119_v29 = vld [vmem:[#allocation5 + $0x208] sm:$0xff] }
  0x2f   :  { %190 = vmatprep.subr.mxu0 %v143_v17  ;;  %261 = vmatprep.subr.mxu1 %v145_v18  ;;  %v121_v30 = vld [vmem:[#allocation5 + $0x218] sm:$0xff]  ;;  %v118_v31 = vld [vmem:[#allocation5 + $0x200] sm:$0xff]  ;;  %v120_v32 = vld [vmem:[#allocation5 + $0x210] sm:$0xff] }
  0x30   :  { %191 = vmatpush1.msra.mxu0 %v142_v19  ;;  %262 = vmatpush1.msra.mxu1 %v144_v20  ;;  %v111_v33 = vld [vmem:[#allocation5 + $0x1c8] sm:$0xff]  ;;  %v113_v34 = vld [vmem:[#allocation5 + $0x1d8] sm:$0xff]  ;;  %v110_v35 = vld [vmem:[#allocation5 + $0x1c0] sm:$0xff] }
  0x31   :  { %192 = vmatprep.subr.mxu0 %v135_v21  ;;  %263 = vmatprep.subr.mxu1 %v137_v22  ;;  %v112_v36 = vld [vmem:[#allocation5 + $0x1d0] sm:$0xff]  ;;  %v103_v37 = vld [vmem:[#allocation5 + $0x188] sm:$0xff]  ;;  %v105_v38 = vld [vmem:[#allocation5 + $0x198] sm:$0xff] }
  0x32   :  { %193 = vmatpush1.msra.mxu0 %v134_v23  ;;  %264 = vmatpush1.msra.mxu1 %v136_v24  ;;  %v102_v39 = vld [vmem:[#allocation5 + $0x180] sm:$0xff]  ;;  %v104_v40 = vld [vmem:[#allocation5 + $0x190] sm:$0xff]  ;;  %v95_v41 = vld [vmem:[#allocation5 + $0x148] sm:$0xff] }
  0x33   :  { %194 = vmatprep.subr.mxu0 %v127_v25  ;;  %265 = vmatprep.subr.mxu1 %v129_v26  ;;  %v97_v42 = vld [vmem:[#allocation5 + $0x158] sm:$0xff]  ;;  %v94_v43 = vld [vmem:[#allocation5 + $0x140] sm:$0xff]  ;;  %v96_v44 = vld [vmem:[#allocation5 + $0x150] sm:$0xff] }
  0x34   :  { %195 = vmatpush1.msra.mxu0 %v126_v27  ;;  %266 = vmatpush1.msra.mxu1 %v128_v28  ;;  %v87_v45 = vld [vmem:[#allocation5 + $0x108] sm:$0xff]  ;;  %v89_v46 = vld [vmem:[#allocation5 + $0x118] sm:$0xff]  ;;  %v86_v47 = vld [vmem:[#allocation5 + $0x100] sm:$0xff] }
  0x35   :  { %196 = vmatprep.subr.mxu0 %v119_v29  ;;  %267 = vmatprep.subr.mxu1 %v121_v30  ;;  %v88_v48 = vld [vmem:[#allocation5 + $0x110] sm:$0xff]  ;;  %v79_v49 = vld [vmem:[#allocation5 + $0xc8] sm:$0xff]  ;;  %v81_v50 = vld [vmem:[#allocation5 + $0xd8] sm:$0xff] }
  0x36   :  { %197 = vmatpush1.msra.mxu0 %v118_v31  ;;  %268 = vmatpush1.msra.mxu1 %v120_v32  ;;  %v78_v51 = vld [vmem:[#allocation5 + $0xc0] sm:$0xff]  ;;  %v80_v52 = vld [vmem:[#allocation5 + $0xd0] sm:$0xff]  ;;  %v71_v53 = vld [vmem:[#allocation5 + $0x88] sm:$0xff] }
  0x37   :  { %198 = vmatprep.subr.mxu0 %v111_v33  ;;  %269 = vmatprep.subr.mxu1 %v113_v34  ;;  %v73_v54 = vld [vmem:[#allocation5 + $0x98] sm:$0xff]  ;;  %v70_v55 = vld [vmem:[#allocation5 + $0x80] sm:$0xff]  ;;  %v72_v56 = vld [vmem:[#allocation5 + $0x90] sm:$0xff] }
  0x38   :  { %199 = vmatpush1.msra.mxu0 %v110_v35  ;;  %270 = vmatpush1.msra.mxu1 %v112_v36  ;;  %v63_v57 = vld [vmem:[#allocation5 + $0x48] sm:$0xff]  ;;  %v65_v58 = vld [vmem:[#allocation5 + $0x58] sm:$0xff]  ;;  %v62_v60 = vld [vmem:[#allocation5 + $0x40] sm:$0xff] }
  0x39   :  { %200 = vmatprep.subr.mxu0 %v103_v37  ;;  %271 = vmatprep.subr.mxu1 %v105_v38  ;;  %v52_v59 = vld [vmem:[#allocation2] sm:$0xff]  ;;  %v64_v61 = vld [vmem:[#allocation5 + $0x50] sm:$0xff]  ;;  %v55_v62 = vld [vmem:[#allocation5 + $0x8] sm:$0xff] }
  0x3a   :  { %201 = vmatpush1.msra.mxu0 %v102_v39  ;;  %272 = vmatpush1.msra.mxu1 %v104_v40  ;;  %v57_v63 = vld [vmem:[#allocation5 + $0x18] sm:$0xff]  ;;  %v54_v1 = vld [vmem:[#allocation5] sm:$0xff]  ;;  %v56_v2 = vld [vmem:[#allocation5 + $0x10] sm:$0xff]  ;;  %v1077_v3 = vcvt.s32.f32 %v52_v59 }
  0x3b   :  { %202 = vmatprep.subr.mxu0 %v95_v41  ;;  %273 = vmatprep.subr.mxu1 %v97_v42  ;;  %v179_v4 = vld [vmem:[#allocation5 + $0x3e8] sm:$0xff]  ;;  %v181_v5 = vld [vmem:[#allocation5 + $0x3f8] sm:$0xff]  ;;  %v178_v6 = vld [vmem:[#allocation5 + $0x3e0] sm:$0xff] }
  0x3c   :  { %203 = vmatpush1.msra.mxu0 %v94_v43  ;;  %274 = vmatpush1.msra.mxu1 %v96_v44  ;;  %v180_v7 = vld [vmem:[#allocation5 + $0x3f0] sm:$0xff]  ;;  %v171_v8 = vld [vmem:[#allocation5 + $0x3a8] sm:$0xff]  ;;  %v173_v9 = vld [vmem:[#allocation5 + $0x3b8] sm:$0xff] }
  0x3d   :  { %204 = vmatprep.subr.mxu0 %v87_v45  ;;  %275 = vmatprep.subr.mxu1 %v89_v46  ;;  %v170_v10 = vld [vmem:[#allocation5 + $0x3a0] sm:$0xff]  ;;  %v172_v11 = vld [vmem:[#allocation5 + $0x3b0] sm:$0xff]  ;;  %v163_v12 = vld [vmem:[#allocation5 + $0x368] sm:$0xff] }
  0x3e   :  { %205 = vmatpush1.msra.mxu0 %v86_v47  ;;  %276 = vmatpush1.msra.mxu1 %v88_v48  ;;  %v165_v13 = vld [vmem:[#allocation5 + $0x378] sm:$0xff]  ;;  %v162_v14 = vld [vmem:[#allocation5 + $0x360] sm:$0xff]  ;;  %v164_v15 = vld [vmem:[#allocation5 + $0x370] sm:$0xff] }
  0x3f   :  { %206 = vmatprep.subr.mxu0 %v79_v49  ;;  %277 = vmatprep.subr.mxu1 %v81_v50  ;;  %v155_v16 = vld [vmem:[#allocation5 + $0x328] sm:$0xff]  ;;  %v157_v17 = vld [vmem:[#allocation5 + $0x338] sm:$0xff]  ;;  %v154_v18 = vld [vmem:[#allocation5 + $0x320] sm:$0xff] }
  0x40   :  { %207 = vmatpush1.msra.mxu0 %v78_v51  ;;  %278 = vmatpush1.msra.mxu1 %v80_v52  ;;  %v156_v19 = vld [vmem:[#allocation5 + $0x330] sm:$0xff]  ;;  %v147_v20 = vld [vmem:[#allocation5 + $0x2e8] sm:$0xff]  ;;  %v149_v21 = vld [vmem:[#allocation5 + $0x2f8] sm:$0xff] }
  0x41   :  { %208 = vmatprep.subr.mxu0 %v71_v53  ;;  %279 = vmatprep.subr.mxu1 %v73_v54  ;;  %v146_v22 = vld [vmem:[#allocation5 + $0x2e0] sm:$0xff]  ;;  %v148_v23 = vld [vmem:[#allocation5 + $0x2f0] sm:$0xff]  ;;  %v139_v24 = vld [vmem:[#allocation5 + $0x2a8] sm:$0xff] }
  0x42   :  { %209 = vmatpush1.msra.mxu0 %v70_v55  ;;  %280 = vmatpush1.msra.mxu1 %v72_v56  ;;  %v141_v25 = vld [vmem:[#allocation5 + $0x2b8] sm:$0xff]  ;;  %v138_v26 = vld [vmem:[#allocation5 + $0x2a0] sm:$0xff]  ;;  %v140_v27 = vld [vmem:[#allocation5 + $0x2b0] sm:$0xff] }
  0x43   :  { %210 = vmatprep.subr.mxu0 %v63_v57  ;;  %281 = vmatprep.subr.mxu1 %v65_v58  ;;  %v131_v28 = vld [vmem:[#allocation5 + $0x268] sm:$0xff]  ;;  %v133_v29 = vld [vmem:[#allocation5 + $0x278] sm:$0xff]  ;;  %v130_v30 = vld [vmem:[#allocation5 + $0x260] sm:$0xff] }
  0x44   :  { %211 = vmatpush1.msra.mxu0 %v62_v60  ;;  %282 = vmatpush1.msra.mxu1 %v64_v61  ;;  %v132_v31 = vld [vmem:[#allocation5 + $0x270] sm:$0xff]  ;;  %v123_v32 = vld [vmem:[#allocation5 + $0x228] sm:$0xff]  ;;  %v125_v33 = vld [vmem:[#allocation5 + $0x238] sm:$0xff] }
  0x45   :  { %212 = vmatprep.subr.mxu0 %v55_v62  ;;  %283 = vmatprep.subr.mxu1 %v57_v63  ;;  %v122_v34 = vld [vmem:[#allocation5 + $0x220] sm:$0xff]  ;;  %v124_v35 = vld [vmem:[#allocation5 + $0x230] sm:$0xff]  ;;  %v115_v36 = vld [vmem:[#allocation5 + $0x1e8] sm:$0xff] }
  0x46   :  { %213 = vmatpush1.msra.mxu0 %v54_v1  ;;  %284 = vmatpush1.msra.mxu1 %v56_v2  ;;  %v117_v37 = vld [vmem:[#allocation5 + $0x1f8] sm:$0xff]  ;;  %v114_v38 = vld [vmem:[#allocation5 + $0x1e0] sm:$0xff]  ;;  %v116_v39 = vld [vmem:[#allocation5 + $0x1f0] sm:$0xff] }
  0x47   :  { %247 = vmatmul.mubr.f32.vlgmr.msra.gmra.mxu0 %v1077_v3  ;;  %318 = vmatmul.mubr.f32.vlgmr.msra.gmra.mxu1 %v1077_v3  ;;  %v107_v40 = vld [vmem:[#allocation5 + $0x1a8] sm:$0xff]  ;;  %v109_v41 = vld [vmem:[#allocation5 + $0x1b8] sm:$0xff]  ;;  %v106_v42 = vld [vmem:[#allocation5 + $0x1a0] sm:$0xff] }
  0x48   :  { %324 = vmatprep.subr.mxu0 %v179_v4  ;;  %395 = vmatprep.subr.mxu1 %v181_v5  ;;  %v108_v43 = vld [vmem:[#allocation5 + $0x1b0] sm:$0xff]  ;;  %v99_v44 = vld [vmem:[#allocation5 + $0x168] sm:$0xff]  ;;  %v101_v45 = vld [vmem:[#allocation5 + $0x178] sm:$0xff] }
  0x49   :  { %325 = vmatpush1.msra.mxu0 %v178_v6  ;;  %396 = vmatpush1.msra.mxu1 %v180_v7  ;;  %v98_v46 = vld [vmem:[#allocation5 + $0x160] sm:$0xff]  ;;  %v100_v47 = vld [vmem:[#allocation5 + $0x170] sm:$0xff]  ;;  %v91_v48 = vld [vmem:[#allocation5 + $0x128] sm:$0xff]  ;;  %v482_v6 = vlaneseq }
  0x4a   :  { %326 = vmatprep.subr.mxu0 %v171_v8  ;;  %397 = vmatprep.subr.mxu1 %v173_v9  ;;  %v93_v49 = vld [vmem:[#allocation5 + $0x138] sm:$0xff]  ;;  %v90_v50 = vld [vmem:[#allocation5 + $0x120] sm:$0xff]  ;;  %v92_v51 = vld [vmem:[#allocation5 + $0x130] sm:$0xff] }
  0x4b   :  { %327 = vmatpush1.msra.mxu0 %v170_v10  ;;  %398 = vmatpush1.msra.mxu1 %v172_v11  ;;  %v83_v52 = vld [vmem:[#allocation5 + $0xe8] sm:$0xff]  ;;  %v85_v53 = vld [vmem:[#allocation5 + $0xf8] sm:$0xff]  ;;  %v82_v54 = vld [vmem:[#allocation5 + $0xe0] sm:$0xff]  ;;  %v483_v7 = vshrl.u32 %v482_v6, 7 }
  0x4c   :  { %328 = vmatprep.subr.mxu0 %v163_v12  ;;  %399 = vmatprep.subr.mxu1 %v165_v13  ;;  %v84_v55 = vld [vmem:[#allocation5 + $0xf0] sm:$0xff]  ;;  %v75_v56 = vld [vmem:[#allocation5 + $0xa8] sm:$0xff]  ;;  %v77_v57 = vld [vmem:[#allocation5 + $0xb8] sm:$0xff] }
  0x4d   :  { %329 = vmatpush1.msra.mxu0 %v162_v14  ;;  %400 = vmatpush1.msra.mxu1 %v164_v15  ;;  %v74_v58 = vld [vmem:[#allocation5 + $0xa0] sm:$0xff]  ;;  %v76_v59 = vld [vmem:[#allocation5 + $0xb0] sm:$0xff]  ;;  %v67_v60 = vld [vmem:[#allocation5 + $0x68] sm:$0xff]  ;;  %v1085_v8 = vsub.s32 0, %v483_v7  ;;  %v1087_v9 = vsub.s32 1, %v483_v7  ;;  %v1089_v10 = vsub.s32 2, %v483_v7 }
  0x4e   :  { %330 = vmatprep.subr.mxu0 %v155_v16  ;;  %401 = vmatprep.subr.mxu1 %v157_v17  ;;  %v69_v61 = vld [vmem:[#allocation5 + $0x78] sm:$0xff]  ;;  %v66_v62 = vld [vmem:[#allocation5 + $0x60] sm:$0xff]  ;;  %v68_v63 = vld [vmem:[#allocation5 + $0x70] sm:$0xff]  ;;  %v1091_v11 = vsub.s32 3, %v483_v7  ;;  %v1095_v13 = vsub.s32 4, %v483_v7  ;;  %v1097_v14 = vsub.s32 5, %v483_v7 }
  0x4f   :  { %331 = vmatpush1.msra.mxu0 %v154_v18  ;;  %402 = vmatpush1.msra.mxu1 %v156_v19  ;;  %v59_v1 = vld [vmem:[#allocation5 + $0x28] sm:$0xff]  ;;  %v61_v2 = vld [vmem:[#allocation5 + $0x38] sm:$0xff]  ;;  %v58_v4 = vld [vmem:[#allocation5 + $0x20] sm:$0xff]  ;;  %v1101_v15 = vsub.s32 7, %v483_v7 }
  0x50   :  { %332 = vmatprep.subr.mxu0 %v147_v20  ;;  %403 = vmatprep.subr.mxu1 %v149_v21  ;;  %v60_v5 = vld [vmem:[#allocation5 + $0x30] sm:$0xff]  ;;  %v1093_v12 = vld [vmem:[#allocation7] sm:$0xff] }
  0x51   :  { %333 = vmatpush1.msra.mxu0 %v146_v22  ;;  %404 = vmatpush1.msra.mxu1 %v148_v23  ;;  %v485_v16 = vrot.slane %v1093_v12, %v1085_v8  ;;  %v541_v17 = vrot.slane %v1093_v12, %v1087_v9  ;;  %v597_v18 = vrot.slane %v1093_v12, %v1089_v10 }
  0x52   :  { %334 = vmatprep.subr.mxu0 %v139_v24  ;;  %405 = vmatprep.subr.mxu1 %v141_v25  ;;  %v653_v19 = vrot.slane %v1093_v12, %v1091_v11  ;;  %v709_v20 = vrot.slane %v1093_v12, %v1095_v13  ;;  %v765_v21 = vrot.slane %v1093_v12, %v1097_v14  ;;  %v1121_v24 = vld [vmem:[#allocation7 + $0x8] sm:$0xff] }
  0x53   :  { %335 = vmatpush1.msra.mxu0 %v138_v26  ;;  %406 = vmatpush1.msra.mxu1 %v140_v27  ;;  %v877_v23 = vrot.slane %v1093_v12, %v1101_v15 }
  0x54   :  { %336 = vmatprep.subr.mxu0 %v131_v28  ;;  %407 = vmatprep.subr.mxu1 %v133_v29 }
  0x55   :  { %337 = vmatpush1.msra.mxu0 %v130_v30  ;;  %408 = vmatpush1.msra.mxu1 %v132_v31 }
  0x56   :  { %338 = vmatprep.subr.mxu0 %v123_v32  ;;  %409 = vmatprep.subr.mxu1 %v125_v33  ;;  %v489_v33 = vrot.slane %v1121_v24, %v1085_v8 }
  0x57   :  { %339 = vmatpush1.msra.mxu0 %v122_v34  ;;  %410 = vmatpush1.msra.mxu1 %v124_v35  ;;  %v545_v34 = vrot.slane %v1121_v24, %v1087_v9  ;;  %v601_v35 = vrot.slane %v1121_v24, %v1089_v10 }
  0x58   :  { %340 = vmatprep.subr.mxu0 %v115_v36  ;;  %411 = vmatprep.subr.mxu1 %v117_v37  ;;  %v657_v36 = vrot.slane %v1121_v24, %v1091_v11  ;;  %v1147_v37 = vld [vmem:[#allocation7 + $0x18] sm:$0xff] }
  0x59   :  { %341 = vmatpush1.msra.mxu0 %v114_v38  ;;  %412 = vmatpush1.msra.mxu1 %v116_v39  ;;  %v713_v39 = vrot.slane %v1121_v24, %v1095_v13 }
  0x5a   :  { %342 = vmatprep.subr.mxu0 %v107_v40  ;;  %413 = vmatprep.subr.mxu1 %v109_v41  ;;  %v769_v40 = vrot.slane %v1121_v24, %v1097_v14 }
  0x5b   :  { %343 = vmatpush1.msra.mxu0 %v106_v42  ;;  %414 = vmatpush1.msra.mxu1 %v108_v43  ;;  %v881_v42 = vrot.slane %v1121_v24, %v1101_v15 }
  0x5c   :  { %344 = vmatprep.subr.mxu0 %v99_v44  ;;  %415 = vmatprep.subr.mxu1 %v101_v45 }
  0x5d   :  { %345 = vmatpush1.msra.mxu0 %v98_v46  ;;  %416 = vmatpush1.msra.mxu1 %v100_v47  ;;  %v497_v47 = vrot.slane %v1147_v37, %v1085_v8 }
  0x5e   :  { %346 = vmatprep.subr.mxu0 %v91_v48  ;;  %417 = vmatprep.subr.mxu1 %v93_v49  ;;  %v553_v49 = vrot.slane %v1147_v37, %v1087_v9 }
  0x5f   :  { %347 = vmatpush1.msra.mxu0 %v90_v50  ;;  %418 = vmatpush1.msra.mxu1 %v92_v51  ;;  %v609_v50 = vrot.slane %v1147_v37, %v1089_v10 }
  0x60   :  { %348 = vmatprep.subr.mxu0 %v83_v52  ;;  %419 = vmatprep.subr.mxu1 %v85_v53  ;;  %v665_v52 = vrot.slane %v1147_v37, %v1091_v11 }
  0x61   :  { %349 = vmatpush1.msra.mxu0 %v82_v54  ;;  %420 = vmatpush1.msra.mxu1 %v84_v55 }
  0x62   :  { %350 = vmatprep.subr.mxu0 %v75_v56  ;;  %421 = vmatprep.subr.mxu1 %v77_v57 }
  0x63   :  { %351 = vmatpush1.msra.mxu0 %v74_v58  ;;  %422 = vmatpush1.msra.mxu1 %v76_v59 }
  0x64   :  { %352 = vmatprep.subr.mxu0 %v67_v60  ;;  %423 = vmatprep.subr.mxu1 %v69_v61 }
  0x65   :  { %353 = vmatpush1.msra.mxu0 %v66_v62  ;;  %424 = vmatpush1.msra.mxu1 %v68_v63 }
  0x66   :  { %354 = vmatprep.subr.mxu0 %v59_v1  ;;  %425 = vmatprep.subr.mxu1 %v61_v2 }
  0x67   :  { %355 = vmatpush1.msra.mxu0 %v58_v4  ;;  %388 = vmatprep.mubr.f32.mxu0 %v1044_v0 }
  0x68   :  { %426 = vmatpush1.msra.mxu1 %v60_v5  ;;  %459 = vmatprep.mubr.f32.mxu1 %v1044_v0  ;;  %v1099_v0 = vsub.s32 6, %v483_v7 }
  0x69   :  { %389 = vmatmul.mubr.f32.vlgmr.msra.gmra.mxu0 %v1077_v3  ;;  %460 = vmatmul.mubr.f32.vlgmr.msra.gmra.mxu1 %v1077_v3  ;;  %v1103_v3 = vld [vmem:[#allocation7 + $0x10] sm:$0xff] }
  0x6a   :  { %v821_v22 = vrot.slane %v1093_v12, %v1099_v0  ;;  %v493_v25 = vrot.slane %v1103_v3, %v1085_v8  ;;  %v549_v26 = vrot.slane %v1103_v3, %v1087_v9  ;;  %v605_v27 = vrot.slane %v1103_v3, %v1089_v10 }
  0x6b   :  { %v661_v28 = vrot.slane %v1103_v3, %v1091_v11  ;;  %v717_v29 = vrot.slane %v1103_v3, %v1095_v13  ;;  %v773_v30 = vrot.slane %v1103_v3, %v1097_v14  ;;  %v829_v31 = vrot.slane %v1103_v3, %v1099_v0 }
  0x6c   :  { %v885_v32 = vrot.slane %v1103_v3, %v1101_v15  ;;  %v825_v41 = vrot.slane %v1121_v24, %v1099_v0 }
 0x107   :  { %v248_v38 = vpop.f32.mrf.mxu0  ;;  %v319_v46 = vpop.f32.mrf.mxu1 }
 0x108   :  { %vm474_vm0 = vcmp.eq.f32.partialorder %v248_v38, 1.0  ;;  %vm530_vm1 = vcmp.eq.f32.partialorder %v248_v38, 2.0  ;;  %vm586_vm2 = vcmp.eq.f32.partialorder %v248_v38, 3.0  ;;  %vm642_vm3 = vcmp.eq.f32.partialorder %v248_v38, 4.0 }
 0x109   :  { %v514_v43 = vsel %vm474_vm0, %v485_v16, 0.0  ;;  %v570_v44 = vsel %vm530_vm1, %v541_v17, 0.0  ;;  %v626_v45 = vsel %vm586_vm2, %v597_v18, 0.0  ;;  %vm698_vm4 = vcmp.eq.f32.partialorder %v248_v38, 5.0  ;;  %v1165_v61 = vpop.f32.mrf.mxu0 }
 0x10a   :  { %v578_v48 = vadd.f32 %v570_v44, %v514_v43  ;;  %v682_v51 = vsel %vm642_vm3, %v653_v19, 0.0  ;;  %vm754_vm5 = vcmp.eq.f32.partialorder %v248_v38, 6.0  ;;  %vm810_vm6 = vcmp.eq.f32.partialorder %v248_v38, 7.0 }
 0x10b   :  { %v738_v54 = vsel %vm698_vm4, %v709_v20, 0.0  ;;  %vm476_vm7 = vcmp.eq.f32.partialorder %v319_v46, 1.0  ;;  %vm532_vm8 = vcmp.eq.f32.partialorder %v319_v46, 2.0  ;;  %vm588_vm9 = vcmp.eq.f32.partialorder %v319_v46, 3.0 }
 0x10c   :  { %v634_v53 = vadd.f32 %v626_v45, %v578_v48  ;;  %v516_v55 = vsel %vm476_vm7, %v493_v25, 0.0  ;;  %v572_v56 = vsel %vm532_vm8, %v549_v26, 0.0  ;;  %vm644_vm10 = vcmp.eq.f32.partialorder %v319_v46, 4.0 }
 0x10d   :  { %v794_v58 = vsel %vm754_vm5, %v765_v21, 0.0  ;;  %v580_v59 = vadd.f32 %v572_v56, %v516_v55  ;;  %v628_v60 = vsel %vm588_vm9, %v605_v27, 0.0  ;;  %v850_v62 = vsel %vm810_vm6, %v821_v22, 0.0  ;;  %v321_v22 = vpop.f32.mrf.mxu1  ;;  %v1222_v56 = vld [vmem:[#allocation7 + $0x20] sm:$0xff] }
 0x10e   :  { %v690_v57 = vadd.f32 %v682_v51, %v634_v53  ;;  %vm866_vm11 = vcmp.eq.f32.partialorder %v248_v38, 8.0  ;;  %v684_v63 = vsel %vm644_vm10, %v661_v28, 0.0  ;;  %vm700_vm12 = vcmp.eq.f32.partialorder %v319_v46, 5.0 }
 0x10f   :  { %v636_v2 = vadd.f32 %v628_v60, %v580_v59  ;;  %vm756_vm13 = vcmp.eq.f32.partialorder %v319_v46, 6.0  ;;  %vm812_vm14 = vcmp.eq.f32.partialorder %v319_v46, 7.0  ;;  %v740_v4 = vsel %vm700_vm12, %v717_v29, 0.0  ;;  %v1228_v60 = vld [vmem:[#allocation7 + $0x30] sm:$0xff] }
 0x110   :  { %v746_v1 = vadd.f32 %v738_v54, %v690_v57  ;;  %vm868_vm15 = vcmp.eq.f32.partialorder %v319_v46, 8.0  ;;  %vm475_vm0 = vcmp.eq.f32.partialorder %v1165_v61, 1.0  ;;  %vm531_vm1 = vcmp.eq.f32.partialorder %v1165_v61, 2.0 }
 0x111   :  { %v692_v6 = vadd.f32 %v684_v63, %v636_v2  ;;  %v515_v7 = vsel %vm475_vm0, %v489_v33, 0.0  ;;  %v571_v16 = vsel %vm531_vm1, %v545_v34, 0.0  ;;  %vm587_vm2 = vcmp.eq.f32.partialorder %v1165_v61, 3.0 }
 0x112   :  { %v802_v5 = vadd.f32 %v794_v58, %v746_v1  ;;  %v579_v17 = vadd.f32 %v571_v16, %v515_v7  ;;  %vm643_vm3 = vcmp.eq.f32.partialorder %v1165_v61, 4.0  ;;  %vm699_vm4 = vcmp.eq.f32.partialorder %v1165_v61, 5.0 }
 0x113   :  { %v906_v19 = vsel %vm866_vm11, %v877_v23, 0.0  ;;  %v748_v20 = vadd.f32 %v740_v4, %v692_v6  ;;  %v627_v21 = vsel %vm587_vm2, %v601_v35, 0.0  ;;  %v796_v25 = vsel %vm756_vm13, %v773_v30, 0.0  ;;  %v1242_v6 = vld [vmem:[#allocation7 + $0x28] sm:$0xff] }
 0x114   :  { %v858_v18 = vadd.f32 %v850_v62, %v802_v5  ;;  %v852_v26 = vsel %vm812_vm14, %v829_v31, 0.0  ;;  %v908_v12 = vsel %vm868_vm15, %v885_v32, 0.0  ;;  %v635_v27 = vadd.f32 %v627_v21, %v579_v17 }
 0x115   :  { %v804_v28 = vadd.f32 %v796_v25, %v748_v20  ;;  %v683_v29 = vsel %vm643_vm3, %v657_v36, 0.0  ;;  %v739_v30 = vsel %vm699_vm4, %v713_v39, 0.0  ;;  %vm755_vm5 = vcmp.eq.f32.partialorder %v1165_v61, 6.0 }
 0x116   :  { %v914_v23 = vadd.f32 %v906_v19, %v858_v18  ;;  %v691_v33 = vadd.f32 %v683_v29, %v635_v27  ;;  %vm477_vm6 = vcmp.eq.f32.partialorder %v321_v22, 1.0  ;;  %vm533_vm7 = vcmp.eq.f32.partialorder %v321_v22, 2.0 }
 0x117   :  { %v860_v3 = vadd.f32 %v852_v26, %v804_v28  ;;  %vm811_vm8 = vcmp.eq.f32.partialorder %v1165_v61, 7.0  ;;  %v517_v31 = vsel %vm477_vm6, %v497_v47, 0.0  ;;  %v573_v32 = vsel %vm533_vm7, %v553_v49, 0.0 }
 0x118   :  { %922 = vst [vmem:[#allocation8] sm:$0xff] %v914_v23  ;;  %v747_v34 = vadd.f32 %v739_v30, %v691_v33  ;;  %v581_v35 = vadd.f32 %v573_v32, %v517_v31  ;;  %vm589_vm9 = vcmp.eq.f32.partialorder %v321_v22, 3.0  ;;  %vm645_vm10 = vcmp.eq.f32.partialorder %v321_v22, 4.0  ;;  %v1268_v23 = vld [vmem:[#allocation7 + $0x38] sm:$0xff] }
 0x119   :  { %v916_v36 = vadd.f32 %v908_v12, %v860_v3  ;;  %v795_v38 = vsel %vm755_vm5, %v769_v40, 0.0  ;;  %v629_v39 = vsel %vm589_vm9, %v609_v50, 0.0  ;;  %v721_v43 = vrot.slane %v1147_v37, %v1095_v13 }
 0x11a   :  { %v803_v44 = vadd.f32 %v795_v38, %v747_v34  ;;  %vm867_vm11 = vcmp.eq.f32.partialorder %v1165_v61, 8.0  ;;  %v637_v45 = vadd.f32 %v629_v39, %v581_v35  ;;  %vm701_vm12 = vcmp.eq.f32.partialorder %v321_v22, 5.0 }
 0x11b   :  { %924 = vst [vmem:[#allocation8 + $0x10] sm:$0xff] %v916_v36  ;;  %v851_v46 = vsel %vm811_vm8, %v825_v41, 0.0  ;;  %v685_v40 = vsel %vm645_vm10, %v665_v52, 0.0  ;;  %v777_v47 = vrot.slane %v1147_v37, %v1097_v14  ;;  %vm757_vm13 = vcmp.eq.f32.partialorder %v321_v22, 6.0 }
 0x11c   :  { %v859_v48 = vadd.f32 %v851_v46, %v803_v44  ;;  %v693_v49 = vadd.f32 %v685_v40, %v637_v45  ;;  %v907_v50 = vsel %vm867_vm11, %v881_v42, 0.0  ;;  %v741_v51 = vsel %vm701_vm12, %v721_v43, 0.0 }
 0x11d   :  { %v833_v53 = vrot.slane %v1147_v37, %v1099_v0  ;;  %vm813_vm14 = vcmp.eq.f32.partialorder %v321_v22, 7.0  ;;  %v797_v55 = vsel %vm757_vm13, %v777_v47, 0.0  ;;  %v889_v52 = vrot.slane %v1147_v37, %v1101_v15 }
 0x11e   :  { %v915_v54 = vadd.f32 %v907_v50, %v859_v48  ;;  %v749_v41 = vadd.f32 %v741_v51, %v693_v49  ;;  %vm869_vm15 = vcmp.eq.f32.partialorder %v321_v22, 8.0  ;;  %v501_v24 = vrot.slane %v1222_v56, %v1085_v8 }
 0x11f   :  { %v853_v58 = vsel %vm813_vm14, %v833_v53, 0.0  ;;  %v557_v42 = vrot.slane %v1222_v56, %v1087_v9  ;;  %v909_v61 = vsel %vm869_vm15, %v889_v52, 0.0  ;;  %v613_v62 = vrot.slane %v1222_v56, %v1089_v10 }
 0x120   :  { %923 = vst [vmem:[#allocation8 + $0x8] sm:$0xff] %v915_v54  ;;  %v805_v57 = vadd.f32 %v797_v55, %v749_v41  ;;  %v669_v37 = vrot.slane %v1222_v56, %v1091_v11  ;;  %v725_v63 = vrot.slane %v1222_v56, %v1095_v13  ;;  %v781_v2 = vrot.slane %v1222_v56, %v1097_v14 }
 0x121   :  { %v837_v4 = vrot.slane %v1222_v56, %v1099_v0  ;;  %v893_v5 = vrot.slane %v1222_v56, %v1101_v15  ;;  %v509_v7 = vrot.slane %v1228_v60, %v1085_v8  ;;  %v565_v16 = vrot.slane %v1228_v60, %v1087_v9 }
 0x122   :  { %v861_v59 = vadd.f32 %v853_v58, %v805_v57  ;;  %v621_v17 = vrot.slane %v1228_v60, %v1089_v10  ;;  %v677_v18 = vrot.slane %v1228_v60, %v1091_v11  ;;  %v733_v19 = vrot.slane %v1228_v60, %v1095_v13 }
 0x123   :  { %v789_v20 = vrot.slane %v1228_v60, %v1097_v14  ;;  %v845_v21 = vrot.slane %v1228_v60, %v1099_v0  ;;  %v901_v22 = vrot.slane %v1228_v60, %v1101_v15  ;;  %v505_v25 = vrot.slane %v1242_v6, %v1085_v8 }
 0x124   :  { %v917_v1 = vadd.f32 %v909_v61, %v861_v59  ;;  %v561_v26 = vrot.slane %v1242_v6, %v1087_v9  ;;  %v617_v12 = vrot.slane %v1242_v6, %v1089_v10  ;;  %v673_v27 = vrot.slane %v1242_v6, %v1091_v11 }
 0x125   :  { %v729_v29 = vrot.slane %v1242_v6, %v1095_v13  ;;  %v785_v30 = vrot.slane %v1242_v6, %v1097_v14  ;;  %v841_v33 = vrot.slane %v1242_v6, %v1099_v0  ;;  %v897_v3 = vrot.slane %v1242_v6, %v1101_v15 }
 0x126   :  { %925 = vst [vmem:[#allocation8 + $0x18] sm:$0xff] %v917_v1  ;;  %v513_v35 = vrot.slane %v1268_v23, %v1085_v8  ;;  %v569_v36 = vrot.slane %v1268_v23, %v1087_v9  ;;  %v625_v39 = vrot.slane %v1268_v23, %v1089_v10  ;;  %v681_v43 = vrot.slane %v1268_v23, %v1091_v11 }
 0x127   :  { %v737_v8 = vrot.slane %v1268_v23, %v1095_v13  ;;  %v905_v11 = vrot.slane %v1268_v23, %v1101_v15 }
 0x129   :  { %v390_v28 = vpop.f32.mrf.mxu0  ;;  %v461_v34 = vpop.f32.mrf.mxu1 }
 0x12a   :  { %vm478_vm0 = vcmp.eq.f32.partialorder %v390_v28, 1.0  ;;  %vm534_vm1 = vcmp.eq.f32.partialorder %v390_v28, 2.0  ;;  %vm590_vm2 = vcmp.eq.f32.partialorder %v390_v28, 3.0  ;;  %vm646_vm3 = vcmp.eq.f32.partialorder %v390_v28, 4.0 }
 0x12b   :  { %v518_v31 = vsel %vm478_vm0, %v501_v24, 0.0  ;;  %v574_v32 = vsel %vm534_vm1, %v557_v42, 0.0  ;;  %vm702_vm4 = vcmp.eq.f32.partialorder %v390_v28, 5.0  ;;  %v630_v44 = vsel %vm590_vm2, %v613_v62, 0.0  ;;  %v1286_v54 = vpop.f32.mrf.mxu0 }
 0x12c   :  { %v582_v38 = vadd.f32 %v574_v32, %v518_v31  ;;  %v686_v45 = vsel %vm646_vm3, %v669_v37, 0.0  ;;  %vm758_vm5 = vcmp.eq.f32.partialorder %v390_v28, 6.0  ;;  %vm814_vm6 = vcmp.eq.f32.partialorder %v390_v28, 7.0 }
 0x12d   :  { %v742_v40 = vsel %vm702_vm4, %v725_v63, 0.0  ;;  %vm480_vm7 = vcmp.eq.f32.partialorder %v461_v34, 1.0  ;;  %vm536_vm8 = vcmp.eq.f32.partialorder %v461_v34, 2.0  ;;  %vm592_vm9 = vcmp.eq.f32.partialorder %v461_v34, 3.0 }
 0x12e   :  { %v638_v46 = vadd.f32 %v630_v44, %v582_v38  ;;  %v520_v47 = vsel %vm480_vm7, %v509_v7, 0.0  ;;  %v576_v48 = vsel %vm536_vm8, %v565_v16, 0.0  ;;  %vm648_vm10 = vcmp.eq.f32.partialorder %v461_v34, 4.0 }
 0x12f   :  { %v798_v50 = vsel %vm758_vm5, %v781_v2, 0.0  ;;  %v854_v51 = vsel %vm814_vm6, %v837_v4, 0.0  ;;  %v584_v53 = vadd.f32 %v576_v48, %v520_v47  ;;  %vm870_vm11 = vcmp.eq.f32.partialorder %v390_v28, 8.0  ;;  %v463_v4 = vpop.f32.mrf.mxu1 }
 0x130   :  { %v694_v49 = vadd.f32 %v686_v45, %v638_v46  ;;  %v632_v41 = vsel %vm592_vm9, %v621_v17, 0.0  ;;  %v688_v55 = vsel %vm648_vm10, %v677_v18, 0.0  ;;  %vm704_vm12 = vcmp.eq.f32.partialorder %v461_v34, 5.0 }
 0x131   :  { %v640_v57 = vadd.f32 %v632_v41, %v584_v53  ;;  %vm760_vm13 = vcmp.eq.f32.partialorder %v461_v34, 6.0  ;;  %vm816_vm14 = vcmp.eq.f32.partialorder %v461_v34, 7.0  ;;  %v744_v58 = vsel %vm704_vm12, %v733_v19, 0.0 }
 0x132   :  { %v750_v52 = vadd.f32 %v742_v40, %v694_v49  ;;  %vm872_vm15 = vcmp.eq.f32.partialorder %v461_v34, 8.0  ;;  %vm479_vm0 = vcmp.eq.f32.partialorder %v1286_v54, 1.0  ;;  %vm535_vm1 = vcmp.eq.f32.partialorder %v1286_v54, 2.0 }
 0x133   :  { %v696_v24 = vadd.f32 %v688_v55, %v640_v57  ;;  %v519_v42 = vsel %vm479_vm0, %v505_v25, 0.0  ;;  %v575_v61 = vsel %vm535_vm1, %v561_v26, 0.0  ;;  %vm591_vm2 = vcmp.eq.f32.partialorder %v1286_v54, 3.0 }
 0x134   :  { %v806_v59 = vadd.f32 %v798_v50, %v750_v52  ;;  %v583_v62 = vadd.f32 %v575_v61, %v519_v42  ;;  %vm647_vm3 = vcmp.eq.f32.partialorder %v1286_v54, 4.0  ;;  %vm703_vm4 = vcmp.eq.f32.partialorder %v1286_v54, 5.0 }
 0x135   :  { %v910_v63 = vsel %vm870_vm11, %v893_v5, 0.0  ;;  %v752_v1 = vadd.f32 %v744_v58, %v696_v24  ;;  %v631_v2 = vsel %vm591_vm2, %v617_v12, 0.0  ;;  %v800_v7 = vsel %vm760_vm13, %v789_v20, 0.0 }
 0x136   :  { %v862_v37 = vadd.f32 %v854_v51, %v806_v59  ;;  %v856_v16 = vsel %vm816_vm14, %v845_v21, 0.0  ;;  %v912_v56 = vsel %vm872_vm15, %v901_v22, 0.0  ;;  %v639_v17 = vadd.f32 %v631_v2, %v583_v62 }
 0x137   :  { %v808_v18 = vadd.f32 %v800_v7, %v752_v1  ;;  %v687_v19 = vsel %vm647_vm3, %v673_v27, 0.0  ;;  %v743_v20 = vsel %vm703_vm4, %v729_v29, 0.0  ;;  %vm759_vm5 = vcmp.eq.f32.partialorder %v1286_v54, 6.0 }
 0x138   :  { %v918_v5 = vadd.f32 %v910_v63, %v862_v37  ;;  %v695_v25 = vadd.f32 %v687_v19, %v639_v17  ;;  %vm481_vm6 = vcmp.eq.f32.partialorder %v463_v4, 1.0  ;;  %vm537_vm7 = vcmp.eq.f32.partialorder %v463_v4, 2.0 }
 0x139   :  { %v864_v60 = vadd.f32 %v856_v16, %v808_v18  ;;  %vm815_vm8 = vcmp.eq.f32.partialorder %v1286_v54, 7.0  ;;  %v521_v21 = vsel %vm481_vm6, %v513_v35, 0.0  ;;  %v577_v22 = vsel %vm537_vm7, %v569_v36, 0.0 }
 0x13a   :  { %926 = vst [vmem:[#allocation8 + $0x20] sm:$0xff] %v918_v5  ;;  %v751_v26 = vadd.f32 %v743_v20, %v695_v25  ;;  %v585_v12 = vadd.f32 %v577_v22, %v521_v21  ;;  %vm593_vm9 = vcmp.eq.f32.partialorder %v463_v4, 3.0  ;;  %vm649_vm10 = vcmp.eq.f32.partialorder %v463_v4, 4.0 }
 0x13b   :  { %v920_v27 = vadd.f32 %v912_v56, %v864_v60  ;;  %v799_v28 = vsel %vm759_vm5, %v785_v30, 0.0  ;;  %v633_v29 = vsel %vm593_vm9, %v625_v39, 0.0  ;;  %vm871_vm11 = vcmp.eq.f32.partialorder %v1286_v54, 8.0 }
 0x13c   :  { %v807_v31 = vadd.f32 %v799_v28, %v751_v26  ;;  %v641_v9 = vadd.f32 %v633_v29, %v585_v12  ;;  %vm705_vm12 = vcmp.eq.f32.partialorder %v463_v4, 5.0  ;;  %v855_v32 = vsel %vm815_vm8, %v841_v33, 0.0 }
 0x13d   :  { %928 = vst [vmem:[#allocation8 + $0x30] sm:$0xff] %v920_v27  ;;  %v689_v10 = vsel %vm649_vm10, %v681_v43, 0.0  ;;  %v793_v30 = vrot.slane %v1268_v23, %v1097_v14  ;;  %vm761_vm13 = vcmp.eq.f32.partialorder %v463_v4, 6.0  ;;  %v911_v35 = vsel %vm871_vm11, %v897_v3, 0.0 }
 0x13e   :  { %v863_v13 = vadd.f32 %v855_v32, %v807_v31  ;;  %v697_v34 = vadd.f32 %v689_v10, %v641_v9  ;;  %v745_v36 = vsel %vm705_vm12, %v737_v8, 0.0  ;;  %v849_v38 = vrot.slane %v1268_v23, %v1099_v0 }
 0x13f   :  { %vm817_vm14 = vcmp.eq.f32.partialorder %v463_v4, 7.0  ;;  %v801_v44 = vsel %vm761_vm13, %v793_v30, 0.0  ;;  %vm873_vm15 = vcmp.eq.f32.partialorder %v463_v4, 8.0 }
 0x140   :  { %v919_v39 = vadd.f32 %v911_v35, %v863_v13  ;;  %v753_v33 = vadd.f32 %v745_v36, %v697_v34  ;;  %v857_v43 = vsel %vm817_vm14, %v849_v38, 0.0  ;;  %v913_v6 = vsel %vm873_vm15, %v905_v11, 0.0 }
 0x142   :  { %927 = vst [vmem:[#allocation8 + $0x28] sm:$0xff] %v919_v39  ;;  %v809_v14 = vadd.f32 %v801_v44, %v753_v33 }
 0x144   :  { %v865_v45 = vadd.f32 %v857_v43, %v809_v14 }
 0x146   :  { %v921_v3 = vadd.f32 %v913_v6, %v865_v45 }
 0x148   :  { %929 = vst [vmem:[#allocation8 + $0x38] sm:$0xff] %v921_v3 }
 0x149   :  { %1024 = shalt.err (!%p1021_p5)
}
 0x14a   :  { %939 = dma.vmem_to_hbm [thread:$0]  %s937_s2, 1024, %s1355_s3, [#allocation4]  }
 0x14b   :  { %1037 = dma.done.wait [#allocation4], 1024  }
 0x14c   :  { %1038 = vsyncadd [#allocation4], 4294966272 }
 0x14d   :  { %943 = vsyncpa [#allocation3], 1 }
 0x14e   :  { %944 = vsyncpa [#allocation6], 1 }
 0x14f   :  { %945 = vsyncpa [#allocation4], 1 }

</bundles_post_ra>
